<compile_context>
chip_gen: v7x
topology: tpu7x:2x2x1
jax: 0.10.0
libtpu: 0.0.40
codegen_flags: <defaults>
</compile_context>

<pallas_src>
import numpy as np
import jax
import jax.numpy as jnp
from jax import lax
from jax.experimental import pallas as pl
from jax.experimental.pallas import tpu as pltpu


def _clip_kernel(scale_ref, m_ref, x_ref, lm_ref, lx_ref,
                 acc_ref, sqm_ref, sqx_ref):
    # scale_ref: (1, 1) f32 in SMEM, raw logit_scale (pre-exp)
    # m_ref: (bm, bk) tile of mip features, x_ref: (bn, bk) tile of x features
    # lm_ref: (bm, bn) output tile; lx_ref: (bn, bm) output tile (transposed)
    # acc_ref: (bm, bn) f32; sqm_ref: (bm, 1) f32; sqx_ref: (bn, 1) f32
    k = pl.program_id(2)

    @pl.when(k == 0)
    def _init():
        acc_ref[...] = jnp.zeros_like(acc_ref)
        sqm_ref[...] = jnp.zeros_like(sqm_ref)
        sqx_ref[...] = jnp.zeros_like(sqx_ref)

    a = m_ref[...]
    b = x_ref[...]

    # MXU: contract the feature dim of both operands (A @ B^T) without
    # materializing a transpose; accumulate in f32.
    acc_ref[...] += lax.dot_general(
        a, b,
        dimension_numbers=(((1,), (1,)), ((), ())),
        preferred_element_type=jnp.float32,
    )

    # Accumulate sum-of-squares for the L2 norms from the same tiles.
    a32 = a.astype(jnp.float32)
    b32 = b.astype(jnp.float32)
    sqm_ref[...] += jnp.sum(a32 * a32, axis=1, keepdims=True)
    sqx_ref[...] += jnp.sum(b32 * b32, axis=1, keepdims=True)

    @pl.when(k == pl.num_programs(2) - 1)
    def _finalize():
        scale = jnp.exp(scale_ref[0, 0])
        # Fold exp(logit_scale) into the mip-side inverse norms (B-length mul,
        # not a B*B mul). rsqrt instead of sqrt+divide.
        inv_m = lax.rsqrt(sqm_ref[...]) * scale   # (bm, 1)
        inv_x = lax.rsqrt(sqx_ref[...])           # (bn, 1)

        row_scaled = acc_ref[...] * inv_m         # (bm, bn): scale rows (mip)
        lx_tile = row_scaled.T * inv_x            # (bn, bm): scale rows (x)
        lx_ref[...] = lx_tile.astype(lx_ref.dtype)
        lm_ref[...] = lx_tile.T.astype(lm_ref.dtype)


def _round_up(v, m):
    return (v + m - 1) // m * m


def clip_forward(mip_features, x_features, logit_scale):
    """mip_features / x_features: any shape (B, ...). logit_scale: scalar."""
    B = mip_features.shape[0]
    m = mip_features.reshape(B, -1)
    x = x_features.reshape(B, -1)
    D = m.shape[1]
    assert x.shape == (B, D)

    # ---- tile selection ----------------------------------------------------
    # Batch padded to >=128 so output stores are lane-dense; 256 tiles when
    # they divide evenly (feeds the 256x256 MXU on v6e/v7x), 128 otherwise
    # (maps cleanly to v5e's 128x128 MXU).
    B_pad = _round_up(max(B, 1), 128)
    bm = bn = 256 if B_pad % 256 == 0 else 128
    D1 = _round_up(max(D, 1), 128)
    bk = min(512, D1)
    D_pad = _round_up(D, bk)

    if (B_pad, D_pad) != (B, D):
        m = jnp.pad(m, ((0, B_pad - B), (0, D_pad - D)))
        x = jnp.pad(x, ((0, B_pad - B), (0, D_pad - D)))

    scale_arr = jnp.asarray(logit_scale, jnp.float32).reshape(1, 1)

    grid = (B_pad // bm, B_pad // bn, D_pad // bk)

    out_shapes = (
        jax.ShapeDtypeStruct((B_pad, B_pad), jnp.float32),
        jax.ShapeDtypeStruct((B_pad, B_pad), jnp.float32),
    )

    lm, lx = pl.pallas_call(
        _clip_kernel,
        out_shape=out_shapes,
        grid_spec=pltpu.PrefetchScalarGridSpec(
            num_scalar_prefetch=0,
            grid=grid,
            in_specs=[
                pl.BlockSpec(memory_space=pltpu.SMEM),               # logit_scale
                pl.BlockSpec((bm, bk), lambda i, j, k: (i, k)),      # mip tile
                pl.BlockSpec((bn, bk), lambda i, j, k: (j, k)),      # x tile
            ],
            out_specs=(
                pl.BlockSpec((bm, bn), lambda i, j, k: (i, j)),      # logits_per_mip
                pl.BlockSpec((bn, bm), lambda i, j, k: (j, i)),      # logits_per_x
            ),
            scratch_shapes=[
                pltpu.VMEM((bm, bn), jnp.float32),   # f32 accumulator
                pltpu.VMEM((bm, 1), jnp.float32),    # sum(mip^2)
                pltpu.VMEM((bn, 1), jnp.float32),    # sum(x^2)
            ],
        ),
        compiler_params=pltpu.CompilerParams(
            dimension_semantics=("parallel", "parallel", "arbitrary")),
    )(scale_arr, m, x)

    if B_pad != B:
        lm = lm[:B, :B]
        lx = lx[:B, :B]
    return lm, lx


def _reference(mip_features, x_features, logit_scale):
    B = mip_features.shape[0]
    m = mip_features.reshape(B, -1).astype(jnp.float32)
    x = x_features.reshape(B, -1).astype(jnp.float32)
    m = m / jnp.linalg.norm(m, axis=1, keepdims=True)
    x = x / jnp.linalg.norm(x, axis=1, keepdims=True)
    lm = jnp.exp(logit_scale) * (m @ x.T)
    return lm, lm.T


if __name__ == "__main__":
    key = jax.random.PRNGKey(0)
    k1, k2 = jax.random.split(key)

    # Small shapes: batch=8, features 3x7x7 -> flattened D=147
    # (exercises both the batch-padding and the D-padding paths).
    B, C, H, W = 8, 3, 7, 7
    mip_features = jax.random.normal(k1, (B, C, H, W), dtype=jnp.float32)
    x_features = jax.random.normal(k2, (B, C, H, W), dtype=jnp.float32)

    # Parameter initialized as in __init__: log(1 / 0.07)
    logit_scale = jnp.float32(np.log(1.0 / 0.07))

    logits_per_mip, logits_per_x = clip_forward(
        mip_features, x_features, logit_scale
    )
    jax.block_until_ready((logits_per_mip, logits_per_x))

    ref_lm, ref_lx = _reference(mip_features, x_features, logit_scale)
    np.testing.assert_allclose(np.asarray(logits_per_mip), np.asarray(ref_lm),
                               rtol=1e-4, atol=1e-4)
    np.testing.assert_allclose(np.asarray(logits_per_x), np.asarray(ref_lx),
                               rtol=1e-4, atol=1e-4)

    print("KERNEL_OK")
</pallas_src>

<mosaic_0001>
module attributes {stable_mosaic.version = 11 : i64} {
  func.func @_clip_kernel(%arg0: i32, %arg1: i32, %arg2: i32, %arg3: memref<1x1xf32, #tpu.memory_space<smem>>, %arg4: memref<128x256xf32, #tpu.memory_space<vmem>>, %arg5: memref<128x256xf32, #tpu.memory_space<vmem>>, %arg6: memref<128x128xf32, #tpu.memory_space<vmem>>, %arg7: memref<128x128xf32, #tpu.memory_space<vmem>>, %arg8: memref<128x128xf32, #tpu.memory_space<vmem>>, %arg9: memref<128x1xf32, #tpu.memory_space<vmem>>, %arg10: memref<128x1xf32, #tpu.memory_space<vmem>>) attributes {dimension_semantics = [#tpu.dimension_semantics<parallel>, #tpu.dimension_semantics<parallel>, #tpu.dimension_semantics<arbitrary>], iteration_bounds = array<i64: 1, 1, 1>, scalar_prefetch = 0 : i64, scratch_operands = 3 : i64, tpu.core_type = #tpu.core_type<tc>, window_params = [{transform_indices = @transform_0, window_bounds = array<i64: 1, 1>}, {transform_indices = @transform_1, window_bounds = array<i64: 128, 256>}, {transform_indices = @transform_2, window_bounds = array<i64: 128, 256>}, {transform_indices = @transform_3, window_bounds = array<i64: 128, 128>}, {transform_indices = @transform_4, window_bounds = array<i64: 128, 128>}]} {
    %c0_i32 = arith.constant 0 : i32
    %0 = arith.cmpi eq, %arg2, %c0_i32 : i32
    %1 = arith.extui %0 : i1 to i32
    %c0_i32_0 = arith.constant 0 : i32
    %2 = arith.cmpi ne, %1, %c0_i32_0 : i32
    scf.if %2 {
      %cst_20 = arith.constant 0.000000e+00 : f32
      %24 = vector.broadcast %cst_20 : f32 to vector<128x128xf32>
      %c0_21 = arith.constant 0 : index
      %c0_22 = arith.constant 0 : index
      %25 = vector.load %arg8[%c0_21, %c0_22] : memref<128x128xf32, #tpu.memory_space<vmem>>, vector<128x128xf32>
      tpu.vector_store %arg8[%c0_21, %c0_22], %24 {strides = array<i32>} : memref<128x128xf32, #tpu.memory_space<vmem>>, vector<128x128xf32>,
      %cst_23 = arith.constant 0.000000e+00 : f32
      %26 = vector.broadcast %cst_23 : f32 to vector<128x1xf32>
      %c0_24 = arith.constant 0 : index
      %c0_25 = arith.constant 0 : index
      %27 = vector.load %arg9[%c0_24, %c0_25] : memref<128x1xf32, #tpu.memory_space<vmem>>, vector<128x1xf32>
      tpu.vector_store %arg9[%c0_24, %c0_25], %26 {strides = array<i32>} : memref<128x1xf32, #tpu.memory_space<vmem>>, vector<128x1xf32>,
      %cst_26 = arith.constant 0.000000e+00 : f32
      %28 = vector.broadcast %cst_26 : f32 to vector<128x1xf32>
      %c0_27 = arith.constant 0 : index
      %c0_28 = arith.constant 0 : index
      %29 = vector.load %arg10[%c0_27, %c0_28] : memref<128x1xf32, #tpu.memory_space<vmem>>, vector<128x1xf32>
      tpu.vector_store %arg10[%c0_27, %c0_28], %28 {strides = array<i32>} : memref<128x1xf32, #tpu.memory_space<vmem>>, vector<128x1xf32>,
    } else {
    }
    %c0 = arith.constant 0 : index
    %c0_1 = arith.constant 0 : index
    %3 = vector.load %arg4[%c0, %c0_1] : memref<128x256xf32, #tpu.memory_space<vmem>>, vector<128x256xf32>
    %c0_2 = arith.constant 0 : index
    %c0_3 = arith.constant 0 : index
    %4 = vector.load %arg5[%c0_2, %c0_3] : memref<128x256xf32, #tpu.memory_space<vmem>>, vector<128x256xf32>
    %c0_4 = arith.constant 0 : index
    %c0_5 = arith.constant 0 : index
    %5 = vector.load %arg8[%c0_4, %c0_5] : memref<128x128xf32, #tpu.memory_space<vmem>>, vector<128x128xf32>
    %cst = arith.constant dense<0.000000e+00> : vector<128x128xf32>
    %6 = tpu.matmul %3, %4, %cst {dimension_numbers = #tpu.dot_dimension_numbers<[1], [1], [0], [0], [0, 0, 1, 0], [], []>} : vector<128x256xf32>, vector<128x256xf32>, vector<128x128xf32> -> vector<128x128xf32>
    %7 = arith.addf %5, %6 : vector<128x128xf32>
    %c0_6 = arith.constant 0 : index
    %c0_7 = arith.constant 0 : index
    %8 = vector.load %arg8[%c0_6, %c0_7] : memref<128x128xf32, #tpu.memory_space<vmem>>, vector<128x128xf32>
    tpu.vector_store %arg8[%c0_6, %c0_7], %7 {strides = array<i32>} : memref<128x128xf32, #tpu.memory_space<vmem>>, vector<128x128xf32>,
    %c0_8 = arith.constant 0 : index
    %c0_9 = arith.constant 0 : index
    %9 = vector.load %arg9[%c0_8, %c0_9] : memref<128x1xf32, #tpu.memory_space<vmem>>, vector<128x1xf32>
    %10 = arith.mulf %3, %3 : vector<128x256xf32>
    %cst_10 = arith.constant dense<0.000000e+00> : vector<128xf32>
    %11 = vector.multi_reduction <add>, %10, %cst_10 [1] : vector<128x256xf32> to vector<128xf32>
    %12 = vector.shape_cast %11 : vector<128xf32> to vector<128x1xf32>
    %13 = arith.addf %9, %12 : vector<128x1xf32>
    %c0_11 = arith.constant 0 : index
    %c0_12 = arith.constant 0 : index
    %14 = vector.load %arg9[%c0_11, %c0_12] : memref<128x1xf32, #tpu.memory_space<vmem>>, vector<128x1xf32>
    tpu.vector_store %arg9[%c0_11, %c0_12], %13 {strides = array<i32>} : memref<128x1xf32, #tpu.memory_space<vmem>>, vector<128x1xf32>,
    %c0_13 = arith.constant 0 : index
    %c0_14 = arith.constant 0 : index
    %15 = vector.load %arg10[%c0_13, %c0_14] : memref<128x1xf32, #tpu.memory_space<vmem>>, vector<128x1xf32>
    %16 = arith.mulf %4, %4 : vector<128x256xf32>
    %cst_15 = arith.constant dense<0.000000e+00> : vector<128xf32>
    %17 = vector.multi_reduction <add>, %16, %cst_15 [1] : vector<128x256xf32> to vector<128xf32>
    %18 = vector.shape_cast %17 : vector<128xf32> to vector<128x1xf32>
    %19 = arith.addf %15, %18 : vector<128x1xf32>
    %c0_16 = arith.constant 0 : index
    %c0_17 = arith.constant 0 : index
    %20 = vector.load %arg10[%c0_16, %c0_17] : memref<128x1xf32, #tpu.memory_space<vmem>>, vector<128x1xf32>
    tpu.vector_store %arg10[%c0_16, %c0_17], %19 {strides = array<i32>} : memref<128x1xf32, #tpu.memory_space<vmem>>, vector<128x1xf32>,
    %c0_i32_18 = arith.constant 0 : i32
    %21 = arith.cmpi eq, %arg2, %c0_i32_18 : i32
    %22 = arith.extui %21 : i1 to i32
    %c0_i32_19 = arith.constant 0 : i32
    %23 = arith.cmpi ne, %22, %c0_i32_19 : i32
    scf.if %23 {
      %c0_20 = arith.constant 0 : index
      %c0_21 = arith.constant 0 : index
      %24 = memref.load %arg3[%c0_20, %c0_21] : memref<1x1xf32, #tpu.memory_space<smem>>
      %25 = math.exp %24 : f32
      %c0_22 = arith.constant 0 : index
      %c0_23 = arith.constant 0 : index
      %26 = vector.load %arg9[%c0_22, %c0_23] : memref<128x1xf32, #tpu.memory_space<vmem>>, vector<128x1xf32>
      %27 = math.rsqrt %26 : vector<128x1xf32>
      %28 = vector.broadcast %25 : f32 to vector<128x1xf32>
      %29 = arith.mulf %27, %28 : vector<128x1xf32>
      %c0_24 = arith.constant 0 : index
      %c0_25 = arith.constant 0 : index
      %30 = vector.load %arg10[%c0_24, %c0_25] : memref<128x1xf32, #tpu.memory_space<vmem>>, vector<128x1xf32>
      %31 = math.rsqrt %30 : vector<128x1xf32>
      %c0_26 = arith.constant 0 : index
      %c0_27 = arith.constant 0 : index
      %32 = vector.load %arg8[%c0_26, %c0_27] : memref<128x128xf32, #tpu.memory_space<vmem>>, vector<128x128xf32>
      %33 = vector.broadcast %29 : vector<128x1xf32> to vector<128x128xf32>
      %34 = arith.mulf %32, %33 : vector<128x128xf32>
      %35 = tpu.transpose %34, [1, 0] : vector<128x128xf32> -> vector<128x128xf32>
      %36 = vector.broadcast %31 : vector<128x1xf32> to vector<128x128xf32>
      %37 = arith.mulf %35, %36 : vector<128x128xf32>
      %c0_28 = arith.constant 0 : index
      %c0_29 = arith.constant 0 : index
      %38 = vector.load %arg7[%c0_28, %c0_29] : memref<128x128xf32, #tpu.memory_space<vmem>>, vector<128x128xf32>
      tpu.vector_store %arg7[%c0_28, %c0_29], %37 {strides = array<i32>} : memref<128x128xf32, #tpu.memory_space<vmem>>, vector<128x128xf32>,
      %39 = tpu.transpose %37, [1, 0] : vector<128x128xf32> -> vector<128x128xf32>
      %c0_30 = arith.constant 0 : index
      %c0_31 = arith.constant 0 : index
      %40 = vector.load %arg6[%c0_30, %c0_31] : memref<128x128xf32, #tpu.memory_space<vmem>>, vector<128x128xf32>
      tpu.vector_store %arg6[%c0_30, %c0_31], %39 {strides = array<i32>} : memref<128x128xf32, #tpu.memory_space<vmem>>, vector<128x128xf32>,
    } else {
    }
    return
  }
  func.func @transform_0(%arg0: i32, %arg1: i32, %arg2: i32) -> (i32, i32) {
    %c0_i32 = arith.constant 0 : i32
    %c0_i32_0 = arith.constant 0 : i32
    %c0_i32_1 = arith.constant 0 : i32
    return %c0_i32, %c0_i32_0 : i32, i32
  }
  func.func @transform_1(%arg0: i32, %arg1: i32, %arg2: i32) -> (i32, i32) {
    %c0_i32 = arith.constant 0 : i32
    return %arg0, %arg2 : i32, i32
  }
  func.func @transform_2(%arg0: i32, %arg1: i32, %arg2: i32) -> (i32, i32) {
    %c0_i32 = arith.constant 0 : i32
    return %arg1, %arg2 : i32, i32
  }
  func.func @transform_3(%arg0: i32, %arg1: i32, %arg2: i32) -> (i32, i32) {
    %c0_i32 = arith.constant 0 : i32
    return %arg0, %arg1 : i32, i32
  }
  func.func @transform_4(%arg0: i32, %arg1: i32, %arg2: i32) -> (i32, i32) {
    %c0_i32 = arith.constant 0 : i32
    return %arg1, %arg0 : i32, i32
  }
}

</mosaic_0001>

<bundles_post_ra>
// kernel: tpu_custom_call.1
= control target key start
LH: loop header
LB: loop body
LE: loop exit
PB: predicated region body
PF: predicated region fallthrough
CT: control target
= control target key end

     0   :  { %11 = vsyncpa [#allocation7], 0  ;;  %s1654_s0 = inlined_call_operand.<no memory space> [shape: f32[1,1], index: 0, kind: input, shape index: {}]   ;;  %s1655_s1 = inlined_call_operand.hbm [shape: f32[128,256], index: 1, kind: input, shape index: {}]   ;;  %s1656_s2 = inlined_call_operand.hbm [shape: f32[128,256], index: 2, kind: input, shape index: {}]   ;;  %s1657_s3 = inlined_call_operand.hbm [shape: f32[128,128], index: 3, kind: output, shape index: {0}]   ;;  %s1658_s4 = inlined_call_operand.hbm [shape: f32[128,128], index: 4, kind: output, shape index: {1}]  }
   0x1   :  { %12 = vsyncpa [#allocation10], 0 }
   0x2   :  { %13 = vsyncpa [#allocation8], 0 }
   0x3   :  { %14 = vsyncpa [#allocation13], 0  ;;  %s1265_s15 = smov [#allocation6]   ;;  %s1169_s19 = scalar_lea.hbm %s1655_s1, 4096 }
   0x4   :  { %s22_s16 = sshll.u32 %s1265_s15, 4  ;;  %p1170_p0 = scmp.ne.s32.totalorder %s1655_s1, %s1169_s19  ;;  %s23_s16 = int_to_ptr.vmem [resolvable:$true] %s22_s16 }
   0x5   :  { %p1173_p1 = scmp.lt.u32.totalorder %s1169_s19, %s1655_s1 }
   0x7   :  { %p1175_p2 = pnand %p1173_p1, %p1170_p0 }
   0x9   :  { %1178 = shalt.err (!%p1175_p2)
}
   0xa   :  { %s1179_s24 = scalar_lea.vmem %s23_s16, 4096  ;;  %p1184_p4 = scmp.lt.s32.totalorder %s23_s16, %s23_s16 }
   0xb   :  { %p1180_p3 = scmp.ne.s32.totalorder %s23_s16, %s1179_s24  ;;  %p1185_p5 = scmp.lt.s32.totalorder %s1179_s24, %s1179_s24 }
   0xd   :  { %p1186_p6 = por %p1185_p5, %p1184_p4 }
   0xf   :  { %p1187_p7 = pnand %p1186_p6, %p1180_p3 }
  0x11   :  { %1190 = shalt.err (!%p1187_p7)
}
  0x12   :  { %s1266_s25 = smov 256   ;;  %s1267_s26 = smov 16  }
  0x13   :  { %28 = dma.hbm_to_vmem [thread:$0]  %s1655_s1, 4096, %s23_s16, [#allocation7], %s1266_s25, %s1266_s25, %s1267_s26  }
  0x14   :  { %s1268_s29 = smov [#allocation9]   ;;  %s1191_s7 = scalar_lea.hbm %s1656_s2, 4096 }
  0x15   :  { %s34_s30 = sshll.u32 %s1268_s29, 4  ;;  %p1192_p8 = scmp.ne.s32.totalorder %s1656_s2, %s1191_s7  ;;  %s35_s30 = int_to_ptr.vmem [resolvable:$true] %s34_s30 }
  0x16   :  { %p1195_p9 = scmp.lt.u32.totalorder %s1191_s7, %s1656_s2 }
  0x18   :  { %p1197_p10 = pnand %p1195_p9, %p1192_p8 }
  0x1a   :  { %1200 = shalt.err (!%p1197_p10)
}
  0x1b   :  { %s1201_s12 = scalar_lea.vmem %s35_s30, 4096  ;;  %p1206_p12 = scmp.lt.s32.totalorder %s35_s30, %s35_s30 }
  0x1c   :  { %p1202_p11 = scmp.ne.s32.totalorder %s35_s30, %s1201_s12  ;;  %p1207_p13 = scmp.lt.s32.totalorder %s1201_s12, %s1201_s12 }
  0x1e   :  { %p1208_p0 = por %p1207_p13, %p1206_p12 }
  0x20   :  { %p1209_p1 = pnand %p1208_p0, %p1202_p11 }
  0x22   :  { %1212 = shalt.err (!%p1209_p1)
}
  0x23   :  { %40 = dma.hbm_to_vmem [thread:$0]  %s1656_s2, 4096, %s35_s30, [#allocation10], %s1266_s25, %s1266_s25, %s1267_s26  }
  0x24   :  { %1257 = dma.done.wait [#allocation7], 4096  }
  0x25   :  { %1258 = vsyncadd [#allocation7], 4294963200 }
  0x26   :  { %1259 = dma.done.wait [#allocation10], 4096  }
  0x27   :  { %1260 = vsyncadd [#allocation10], 4294963200  ;;  %v618_v0 = vstv %s1654_s0  ;;  %vm67_vm0 = vcmask 7168   ;;  %v1269_v2 = vmov 0.0   ;;  %v1359_v3 = vld [vmem:[#allocation6 + $0x20] sm:$0xff]  ;;  %v1361_v4 = vld [vmem:[#allocation6 + $0x28] sm:$0xff] }
  0x28   :  { %v619_v1 = vmul.f32 1.442695, %v618_v0  ;;  %70 = vst.msk [vmem:[#allocation3 + $0x10] sm:$0xff] %vm67_vm0, %v1269_v2  ;;  %68 = vst.msk [vmem:[#allocation3] sm:$0xff] %vm67_vm0, %v1269_v2  ;;  %v1363_v5 = vld [vmem:[#allocation6] sm:$0xff]  ;;  %v377_v6 = vmul.f32 %v1359_v3, %v1359_v3  ;;  %v378_v7 = vmul.f32 %v1361_v4, %v1361_v4  ;;  %v101_v8 = vld [vmem:[#allocation6 + $0x8] sm:$0xff] }
  0x29   :  { %69 = vst.msk [vmem:[#allocation3 + $0x8] sm:$0xff] %vm67_vm0, %v1269_v2  ;;  %71 = vst.msk [vmem:[#allocation3 + $0x18] sm:$0xff] %vm67_vm0, %v1269_v2  ;;  %v373_v9 = vmul.f32 %v1363_v5, %v1363_v5  ;;  %v1371_v10 = vld [vmem:[#allocation6 + $0x30] sm:$0xff]  ;;  %v1373_v11 = vld [vmem:[#allocation6 + $0x38] sm:$0xff]  ;;  %v374_v12 = vmul.f32 %v101_v8, %v101_v8  ;;  %244 = vmatprep.mubr.f32.mxu0 %v101_v8  ;;  %s1271_s2 = smov [#allocation12]  }
  0x2a   :  { %72 = vst.msk [vmem:[#allocation3 + $0x20] sm:$0xff] %vm67_vm0, %v1269_v2  ;;  %73 = vst.msk [vmem:[#allocation3 + $0x28] sm:$0xff] %vm67_vm0, %v1269_v2  ;;  %1103 = vpow2.f32 %v619_v1  ;;  %v379_v13 = vmul.f32 %v1371_v10, %v1371_v10  ;;  %v380_v14 = vmul.f32 %v1373_v11, %v1373_v11  ;;  %v1379_v15 = vld [vmem:[#allocation6 + $0x10] sm:$0xff]  ;;  %v1381_v16 = vld [vmem:[#allocation6 + $0x18] sm:$0xff]  ;;  %v411_v18 = vadd.f32 %v378_v7, %v377_v6  ;;  %s1024_s16 = sshll.u32 %s1271_s2, 4  ;;  %s1025_s16 = int_to_ptr.vmem [resolvable:$true] %s1024_s16 }
  0x2b   :  { %74 = vst.msk [vmem:[#allocation3 + $0x30] sm:$0xff] %vm67_vm0, %v1269_v2  ;;  %75 = vst.msk [vmem:[#allocation3 + $0x38] sm:$0xff] %vm67_vm0, %v1269_v2  ;;  %v1383_v17 = vld [vmem:[#allocation6 + $0x50] sm:$0xff]  ;;  %v375_v19 = vmul.f32 %v1379_v15, %v1379_v15  ;;  %v376_v20 = vmul.f32 %v1381_v16, %v1381_v16  ;;  %v1389_v21 = vld [vmem:[#allocation6 + $0x58] sm:$0xff]  ;;  %v405_v24 = vadd.f32 %v374_v12, %v373_v9  ;;  %s1213_s17 = scalar_lea.vmem %s1025_s16, 2048  ;;  %p1218_p3 = scmp.lt.s32.totalorder %s1025_s16, %s1025_s16 }
  0x2c   :  { %76 = vst.msk [vmem:[#allocation3 + $0x40] sm:$0xff] %vm67_vm0, %v1269_v2  ;;  %77 = vst.msk [vmem:[#allocation3 + $0x48] sm:$0xff] %vm67_vm0, %v1269_v2  ;;  %v1391_v22 = vld [vmem:[#allocation6 + $0x40] sm:$0xff]  ;;  %v1393_v23 = vld [vmem:[#allocation6 + $0x48] sm:$0xff]  ;;  %412 = vadd.xlane.f32.xlu1 %v411_v18  ;;  %v414_v25 = vadd.f32 %v380_v14, %v379_v13  ;;  %v383_v26 = vmul.f32 %v1383_v17, %v1383_v17  ;;  %v384_v27 = vmul.f32 %v1389_v21, %v1389_v21  ;;  %p1214_p2 = scmp.ne.s32.totalorder %s1025_s16, %s1213_s17  ;;  %p1219_p4 = scmp.lt.s32.totalorder %s1213_s17, %s1213_s17 }
  0x2d   :  { %78 = vst.msk [vmem:[#allocation3 + $0x50] sm:$0xff] %vm67_vm0, %v1269_v2  ;;  %79 = vst.msk [vmem:[#allocation3 + $0x58] sm:$0xff] %vm67_vm0, %v1269_v2  ;;  %v1399_v28 = vld [vmem:[#allocation9 + $0x8] sm:$0xff]  ;;  %v1401_v29 = vld [vmem:[#allocation9 + $0x18] sm:$0xff]  ;;  %406 = vadd.xlane.f32.xlu0 %v405_v24  ;;  %v408_v31 = vadd.f32 %v376_v20, %v375_v19  ;;  %v381_v32 = vmul.f32 %v1391_v22, %v1391_v22  ;;  %v382_v33 = vmul.f32 %v1393_v23, %v1393_v23 }
  0x2e   :  { %80 = vst.msk [vmem:[#allocation3 + $0x60] sm:$0xff] %vm67_vm0, %v1269_v2  ;;  %81 = vst.msk [vmem:[#allocation3 + $0x68] sm:$0xff] %vm67_vm0, %v1269_v2  ;;  %v1407_v34 = vld [vmem:[#allocation6 + $0x70] sm:$0xff]  ;;  %v1409_v35 = vld [vmem:[#allocation6 + $0x78] sm:$0xff]  ;;  %v1041_v37 = vpack.c.bf16 %v1401_v29, %v1399_v28  ;;  %v420_v41 = vadd.f32 %v384_v27, %v383_v26  ;;  %p1220_p5 = por %p1219_p4, %p1218_p3 }
  0x2f   :  { %82 = vst.msk [vmem:[#allocation3 + $0x70] sm:$0xff] %vm67_vm0, %v1269_v2  ;;  %83 = vst.msk [vmem:[#allocation3 + $0x78] sm:$0xff] %vm67_vm0, %v1269_v2  ;;  %v1411_v36 = vld [vmem:[#allocation6 + $0x60] sm:$0xff]  ;;  %v1415_v38 = vld [vmem:[#allocation6 + $0x68] sm:$0xff]  ;;  %v387_v42 = vmul.f32 %v1407_v34, %v1407_v34  ;;  %v388_v43 = vmul.f32 %v1409_v35, %v1409_v35  ;;  %v417_v47 = vadd.f32 %v382_v33, %v381_v32 }
  0x30   :  { %84 = vst.msk [vmem:[#allocation4] sm:$0xff] %vm67_vm0, %v1269_v2  ;;  %85 = vst.msk [vmem:[#allocation4 + $0x8] sm:$0xff] %vm67_vm0, %v1269_v2  ;;  %v1417_v39 = vld [vmem:[#allocation9] sm:$0xff]  ;;  %v1419_v40 = vld [vmem:[#allocation9 + $0x10] sm:$0xff]  ;;  %1042 = vmatprep.subr.bf16.mxu0 %v1041_v37  ;;  %1073 = vmatprep.subr.bf16.mxu1 %v1041_v37  ;;  %v385_v48 = vmul.f32 %v1411_v36, %v1411_v36  ;;  %v386_v49 = vmul.f32 %v1415_v38, %v1415_v38  ;;  %p1221_p6 = pnand %p1220_p5, %p1214_p2 }
  0x31   :  { %86 = vst.msk [vmem:[#allocation4 + $0x10] sm:$0xff] %vm67_vm0, %v1269_v2  ;;  %87 = vst.msk [vmem:[#allocation4 + $0x18] sm:$0xff] %vm67_vm0, %v1269_v2  ;;  %415 = vadd.xlane.f32.xlu1 %v414_v25  ;;  %v1043_v44 = vpack.c.bf16 %v1419_v40, %v1417_v39  ;;  %v1427_v45 = vld [vmem:[#allocation9 + $0x28] sm:$0xff]  ;;  %v1429_v46 = vld [vmem:[#allocation9 + $0x38] sm:$0xff]  ;;  %409 = vadd.xlane.f32.xlu0 %v408_v31  ;;  %v426_v57 = vadd.f32 %v388_v43, %v387_v42 }
  0x32   :  { %88 = vst.msk [vmem:[#allocation4 + $0x20] sm:$0xff] %vm67_vm0, %v1269_v2  ;;  %89 = vst.msk [vmem:[#allocation4 + $0x28] sm:$0xff] %vm67_vm0, %v1269_v2  ;;  %v1435_v50 = vld [vmem:[#allocation6 + $0x90] sm:$0xff]  ;;  %v1437_v51 = vld [vmem:[#allocation6 + $0x98] sm:$0xff]  ;;  %v1045_v52 = vpack.c.bf16 %v1429_v46, %v1427_v45  ;;  %v423_v62 = vadd.f32 %v386_v49, %v385_v48 }
  0x33   :  { %90 = vst.msk [vmem:[#allocation4 + $0x30] sm:$0xff] %vm67_vm0, %v1269_v2  ;;  %91 = vst.msk [vmem:[#allocation4 + $0x38] sm:$0xff] %vm67_vm0, %v1269_v2  ;;  %v1441_v53 = vld [vmem:[#allocation6 + $0x80] sm:$0xff]  ;;  %v117_v54 = vld [vmem:[#allocation6 + $0x88] sm:$0xff]  ;;  %1044 = vmatpush1.bf16.xpose.msra.mxu0 %v1043_v44  ;;  %1081 = vmatpush1.bf16.xpose.msra.mxu1 %v1043_v44  ;;  %v391_v58 = vmul.f32 %v1435_v50, %v1435_v50  ;;  %v392_v59 = vmul.f32 %v1437_v51, %v1437_v51 }
  0x34   :  { %92 = vst.msk [vmem:[#allocation4 + $0x40] sm:$0xff] %vm67_vm0, %v1269_v2  ;;  %93 = vst.msk [vmem:[#allocation4 + $0x48] sm:$0xff] %vm67_vm0, %v1269_v2  ;;  %v1104_v30 = vpop.eup %1103  ;;  %1046 = vmatprep.subr.bf16.mxu0 %v1045_v52  ;;  %1074 = vmatprep.subr.bf16.mxu1 %v1045_v52  ;;  %v1443_v55 = vld [vmem:[#allocation9 + $0x20] sm:$0xff]  ;;  %v1445_v56 = vld [vmem:[#allocation9 + $0x30] sm:$0xff]  ;;  %v389_v63 = vmul.f32 %v1441_v53, %v1441_v53  ;;  %v390_v0 = vmul.f32 %v117_v54, %v117_v54 }
  0x35   :  { %94 = vst.msk [vmem:[#allocation4 + $0x50] sm:$0xff] %vm67_vm0, %v1269_v2  ;;  %95 = vst.msk [vmem:[#allocation4 + $0x58] sm:$0xff] %vm67_vm0, %v1269_v2  ;;  %421 = vadd.xlane.f32.xlu1 %v420_v41  ;;  %v1451_v60 = vld [vmem:[#allocation9 + $0x48] sm:$0xff]  ;;  %v1453_v61 = vld [vmem:[#allocation9 + $0x58] sm:$0xff]  ;;  %418 = vadd.xlane.f32.xlu0 %v417_v47  ;;  %v1047_v8 = vpack.c.bf16 %v1445_v56, %v1443_v55  ;;  %v432_v12 = vadd.f32 %v392_v59, %v391_v58 }
  0x36   :  { %96 = vst.msk [vmem:[#allocation4 + $0x60] sm:$0xff] %vm67_vm0, %v1269_v2  ;;  %97 = vst.msk [vmem:[#allocation4 + $0x68] sm:$0xff] %vm67_vm0, %v1269_v2  ;;  %v1457_v1 = vld [vmem:[#allocation6 + $0xb0] sm:$0xff]  ;;  %v1461_v6 = vld [vmem:[#allocation6 + $0xa0] sm:$0xff]  ;;  %284 = vmatprep.mubr.f32.mxu1 %v117_v54  ;;  %v1049_v9 = vpack.c.bf16 %v1453_v61, %v1451_v60  ;;  %v429_v18 = vadd.f32 %v390_v0, %v389_v63 }
  0x37   :  { %98 = vst.msk [vmem:[#allocation4 + $0x70] sm:$0xff] %vm67_vm0, %v1269_v2  ;;  %99 = vst.msk [vmem:[#allocation4 + $0x78] sm:$0xff] %vm67_vm0, %v1269_v2  ;;  %v1459_v2 = vld [vmem:[#allocation6 + $0xb8] sm:$0xff]  ;;  %v1463_v7 = vld [vmem:[#allocation6 + $0xa8] sm:$0xff]  ;;  %v395_v13 = vmul.f32 %v1457_v1, %v1457_v1  ;;  %v393_v19 = vmul.f32 %v1461_v6, %v1461_v6 }
  0x38   :  { %1089 = vpush %v1104_v30  ;;  %v396_v14 = vmul.f32 %v1459_v2, %v1459_v2  ;;  %v394_v20 = vmul.f32 %v1463_v7, %v1463_v7  ;;  %v1477_v24 = vld [vmem:[#allocation6 + $0xd0] sm:$0xff]  ;;  %v1479_v25 = vld [vmem:[#allocation6 + $0xd8] sm:$0xff]  ;;  %v1481_v26 = vld [vmem:[#allocation6 + $0xc0] sm:$0xff] }
  0x39   :  { %427 = vadd.xlane.f32.xlu1 %v426_v57  ;;  %424 = vadd.xlane.f32.xlu0 %v423_v62  ;;  %v1483_v27 = vld [vmem:[#allocation6 + $0xc8] sm:$0xff]  ;;  %v1485_v30 = vld [vmem:[#allocation9 + $0x40] sm:$0xff]  ;;  %v142_v31 = vld [vmem:[#allocation9 + $0x50] sm:$0xff]  ;;  %v399_v33 = vmul.f32 %v1477_v24, %v1477_v24  ;;  %v400_v37 = vmul.f32 %v1479_v25, %v1479_v25  ;;  %v397_v44 = vmul.f32 %v1481_v26, %v1481_v26 }
  0x3a   :  { %v438_v32 = vadd.f32 %v396_v14, %v395_v13  ;;  %v1491_v41 = vld [vmem:[#allocation9 + $0x68] sm:$0xff]  ;;  %v1493_v42 = vld [vmem:[#allocation9 + $0x78] sm:$0xff]  ;;  %v435_v43 = vadd.f32 %v394_v20, %v393_v19  ;;  %v398_v47 = vmul.f32 %v1483_v27, %v1483_v27  ;;  %v1499_v48 = vld [vmem:[#allocation6 + $0xf0] sm:$0xff]  ;;  %v1051_v57 = vpack.c.bf16 %v142_v31, %v1485_v30 }
  0x3b   :  { %1048 = vmatpush1.bf16.xpose.msra.mxu0 %v1047_v8  ;;  %1082 = vmatpush1.bf16.xpose.msra.mxu1 %v1047_v8  ;;  %v1501_v49 = vld [vmem:[#allocation6 + $0xf8] sm:$0xff]  ;;  %v1503_v52 = vld [vmem:[#allocation6 + $0xe0] sm:$0xff]  ;;  %v1505_v54 = vld [vmem:[#allocation6 + $0xe8] sm:$0xff]  ;;  %v1053_v58 = vpack.c.bf16 %v1493_v42, %v1491_v41  ;;  %v444_v59 = vadd.f32 %v400_v37, %v399_v33  ;;  %v403_v62 = vmul.f32 %v1499_v48, %v1499_v48 }
  0x3c   :  { %1050 = vmatprep.subr.bf16.mxu0 %v1049_v9  ;;  %1075 = vmatprep.subr.bf16.mxu1 %v1049_v9  ;;  %v404_v63 = vmul.f32 %v1501_v49, %v1501_v49  ;;  %v441_v0 = vadd.f32 %v398_v47, %v397_v44  ;;  %v401_v8 = vmul.f32 %v1503_v52, %v1503_v52  ;;  %v146_v13 = vld [vmem:[#allocation9 + $0x70] sm:$0xff]  ;;  %v149_v20 = vld [vmem:[#allocation9 + $0x88] sm:$0xff] }
  0x3d   :  { %433 = vadd.xlane.f32.xlu1 %v432_v12  ;;  %430 = vadd.xlane.f32.xlu0 %v429_v18  ;;  %v402_v9 = vmul.f32 %v1505_v54, %v1505_v54  ;;  %v144_v12 = vld [vmem:[#allocation9 + $0x60] sm:$0xff]  ;;  %v504_v18 = vmul.f32 %v1419_v40, %v1419_v40  ;;  %v505_v19 = vmul.f32 %v1401_v29, %v1401_v29 }
  0x3e   :  { %v450_v14 = vadd.f32 %v404_v63, %v403_v62  ;;  %v502_v37 = vmul.f32 %v1417_v39, %v1417_v39  ;;  %v1055_v44 = vpack.c.bf16 %v146_v13, %v144_v12  ;;  %v508_v40 = vmul.f32 %v1445_v56, %v1445_v56  ;;  %v150_v62 = vld [vmem:[#allocation9 + $0x90] sm:$0xff] }
  0x3f   :  { %v447_v33 = vadd.f32 %v402_v9, %v401_v8  ;;  %v509_v29 = vmul.f32 %v1429_v46, %v1429_v46  ;;  %v507_v39 = vmul.f32 %v1427_v45, %v1427_v45  ;;  %v512_v56 = vmul.f32 %v142_v31, %v142_v31  ;;  %v155_v8 = vld [vmem:[#allocation9 + $0xb8] sm:$0xff] }
  0x40   :  { %v513_v46 = vmul.f32 %v1453_v61, %v1453_v61  ;;  %v511_v45 = vmul.f32 %v1451_v60, %v1451_v60  ;;  %v517_v31 = vmul.f32 %v1493_v42, %v1493_v42  ;;  %v152_v60 = vld [vmem:[#allocation9 + $0xa0] sm:$0xff] }
  0x41   :  { %439 = vadd.xlane.f32.xlu1 %v438_v32  ;;  %436 = vadd.xlane.f32.xlu0 %v435_v43  ;;  %v151_v32 = vld [vmem:[#allocation9 + $0x98] sm:$0xff]  ;;  %v503_v43 = vmul.f32 %v1399_v28, %v1399_v28  ;;  %v148_v28 = vld [vmem:[#allocation9 + $0x80] sm:$0xff]  ;;  %v543_v63 = vadd.f32 %v509_v29, %v508_v40  ;;  %v520_v40 = vmul.f32 %v150_v62, %v150_v62 }
  0x42   :  { %v1057_v47 = vpack.c.bf16 %v151_v32, %v149_v20  ;;  %v521_v42 = vmul.f32 %v151_v32, %v151_v32  ;;  %v518_v29 = vmul.f32 %v148_v28, %v148_v28  ;;  %v156_v32 = vld [vmem:[#allocation9 + $0xc0] sm:$0xff] }
  0x43   :  { %1052 = vmatpush1.bf16.xpose.msra.mxu0 %v1051_v57  ;;  %1083 = vmatpush1.bf16.xpose.msra.mxu1 %v1051_v57  ;;  %v537_v57 = vadd.f32 %v505_v19, %v504_v18  ;;  %v549_v19 = vadd.f32 %v513_v46, %v512_v56  ;;  %v525_v56 = vmul.f32 %v155_v8, %v155_v8 }
  0x44   :  { %1054 = vmatprep.subr.bf16.mxu0 %v1053_v58  ;;  %1076 = vmatprep.subr.bf16.mxu1 %v1053_v58  ;;  %v534_v58 = vadd.f32 %v503_v43, %v502_v37  ;;  %v514_v37 = vmul.f32 %v144_v12, %v144_v12  ;;  %v515_v43 = vmul.f32 %v1491_v41, %v1491_v41 }
  0x45   :  { %445 = vadd.xlane.f32.xlu1 %v444_v59  ;;  %442 = vadd.xlane.f32.xlu0 %v441_v0  ;;  %v506_v59 = vmul.f32 %v1443_v55, %v1443_v55  ;;  %v153_v0 = vld [vmem:[#allocation9 + $0xa8] sm:$0xff]  ;;  %v510_v55 = vmul.f32 %v1485_v30, %v1485_v30  ;;  %v154_v30 = vld [vmem:[#allocation9 + $0xb0] sm:$0xff] }
  0x46   :  { %v1061_v18 = vpack.c.bf16 %v155_v8, %v153_v0  ;;  %v552_v12 = vadd.f32 %v515_v43, %v514_v37  ;;  %v1063_v41 = vpack.c.bf16 %v154_v30, %v152_v60  ;;  %v162_v37 = vld [vmem:[#allocation9 + $0xf0] sm:$0xff] }
  0x47   :  { %v540_v9 = vadd.f32 %v507_v39, %v506_v59  ;;  %v546_v61 = vadd.f32 %v511_v45, %v510_v55  ;;  %v561_v39 = vadd.f32 %v521_v42, %v520_v40  ;;  %v523_v55 = vmul.f32 %v153_v0, %v153_v0  ;;  %v161_v45 = vld [vmem:[#allocation9 + $0xe8] sm:$0xff]  ;;  %v160_v0 = vld [vmem:[#allocation9 + $0xe0] sm:$0xff] }
  0x48   :  { %v531_v40 = vmul.f32 %v161_v45, %v161_v45  ;;  %v1071_v42 = vpack.c.bf16 %v162_v37, %v160_v0 }
  0x49   :  { %451 = vadd.xlane.f32.xlu1 %v450_v14  ;;  %448 = vadd.xlane.f32.xlu0 %v447_v33  ;;  %v1059_v14 = vpack.c.bf16 %v150_v62, %v148_v28  ;;  %v516_v33 = vmul.f32 %v146_v13, %v146_v13  ;;  %v157_v13 = vld [vmem:[#allocation9 + $0xc8] sm:$0xff]  ;;  %v158_v62 = vld [vmem:[#allocation9 + $0xd0] sm:$0xff]  ;;  %v163_v28 = vld [vmem:[#allocation9 + $0xf8] sm:$0xff] }
  0x4a   :  { %v527_v8 = vmul.f32 %v157_v13, %v157_v13 }
  0x4b   :  { %1056 = vmatpush1.bf16.xpose.msra.mxu0 %v1055_v44  ;;  %1084 = vmatpush1.bf16.xpose.msra.mxu1 %v1055_v44  ;;  %v1270_v44 = vmov 0  }
  0x4c   :  { %1058 = vmatprep.subr.bf16.mxu0 %v1057_v47  ;;  %1077 = vmatprep.subr.bf16.mxu1 %v1057_v47  ;;  %v555_v47 = vadd.f32 %v517_v31, %v516_v33  ;;  %v526_v33 = vmul.f32 %v156_v32, %v156_v32  ;;  %v1067_v31 = vpack.c.bf16 %v158_v62, %v156_v32 }
  0x4d   :  { %538 = vadd.xlane.f32.xlu1 %v537_v57  ;;  %535 = vadd.xlane.f32.xlu0 %v534_v58  ;;  %v159_v57 = vld [vmem:[#allocation9 + $0xd8] sm:$0xff]  ;;  %v519_v58 = vmul.f32 %v149_v20, %v149_v20 }
  0x4e   :  { %1102 = vset.pattern.permute.xlu1 %v1270_v44  ;;  %1101 = vset.pattern.permute.xlu0 %v1270_v44  ;;  %v1065_v59 = vpack.c.bf16 %v159_v57, %v157_v13  ;;  %v532_v44 = vmul.f32 %v162_v37, %v162_v37  ;;  %v371_v37 = vld [vmem:[#allocation3 + $0x70] sm:$0xff] }
  0x4f   :  { %v558_v46 = vadd.f32 %v519_v58, %v518_v29 }
  0x51   :  { %544 = vadd.xlane.f32.xlu1 %v543_v63  ;;  %541 = vadd.xlane.f32.xlu0 %v540_v9  ;;  %v524_v63 = vmul.f32 %v154_v30, %v154_v30  ;;  %v522_v9 = vmul.f32 %v152_v60, %v152_v60  ;;  %v533_v60 = vmul.f32 %v163_v28, %v163_v28 }
  0x52   :  { %v570_v30 = vadd.f32 %v527_v8, %v526_v33 }
  0x53   :  { %1060 = vmatpush1.bf16.xpose.msra.mxu0 %v1059_v14  ;;  %1085 = vmatpush1.bf16.xpose.msra.mxu1 %v1059_v14  ;;  %v567_v20 = vadd.f32 %v525_v56, %v524_v63  ;;  %v528_v14 = vmul.f32 %v158_v62, %v158_v62  ;;  %v370_v62 = vld [vmem:[#allocation3 + $0x68] sm:$0xff] }
  0x54   :  { %1062 = vmatprep.subr.bf16.mxu0 %v1061_v18  ;;  %1078 = vmatprep.subr.bf16.mxu1 %v1061_v18  ;;  %v529_v18 = vmul.f32 %v159_v57, %v159_v57  ;;  %v579_v57 = vadd.f32 %v533_v60, %v532_v44 }
  0x55   :  { %550 = vadd.xlane.f32.xlu1 %v549_v19  ;;  %547 = vadd.xlane.f32.xlu0 %v546_v61  ;;  %v564_v19 = vadd.f32 %v523_v55, %v522_v9  ;;  %v1069_v61 = vpack.c.bf16 %v163_v28, %v161_v45  ;;  %v369_v45 = vld [vmem:[#allocation3 + $0x60] sm:$0xff] }
  0x56   :  { %v573_v43 = vadd.f32 %v529_v18, %v528_v14 }
  0x59   :  { %556 = vadd.xlane.f32.xlu1 %v555_v47  ;;  %553 = vadd.xlane.f32.xlu0 %v552_v12  ;;  %v530_v47 = vmul.f32 %v160_v0, %v160_v0 }
  0x5b   :  { %1064 = vmatpush1.bf16.xpose.msra.mxu0 %v1063_v41  ;;  %1086 = vmatpush1.bf16.xpose.msra.mxu1 %v1063_v41  ;;  %v576_v13 = vadd.f32 %v531_v40, %v530_v47  ;;  %v368_v41 = vld [vmem:[#allocation3 + $0x58] sm:$0xff] }
  0x5c   :  { %1066 = vmatprep.subr.bf16.mxu0 %v1065_v59  ;;  %1079 = vmatprep.subr.bf16.mxu1 %v1065_v59  ;;  %v367_v59 = vld [vmem:[#allocation3 + $0x50] sm:$0xff] }
  0x5d   :  { %562 = vadd.xlane.f32.xlu1 %v561_v39  ;;  %559 = vadd.xlane.f32.xlu0 %v558_v46 }
  0x61   :  { %568 = vadd.xlane.f32.xlu1 %v567_v20  ;;  %565 = vadd.xlane.f32.xlu0 %v564_v19 }
  0x63   :  { %1068 = vmatpush1.bf16.xpose.msra.mxu0 %v1067_v31  ;;  %1087 = vmatpush1.bf16.xpose.msra.mxu1 %v1067_v31  ;;  %v372_v31 = vld [vmem:[#allocation3 + $0x78] sm:$0xff] }
  0x64   :  { %1070 = vmatprep.subr.bf16.mxu0 %v1069_v61  ;;  %1080 = vmatprep.subr.bf16.mxu1 %v1069_v61 }
  0x65   :  { %574 = vadd.xlane.f32.xlu1 %v573_v43  ;;  %571 = vadd.xlane.f32.xlu0 %v570_v30 }
  0x69   :  { %580 = vadd.xlane.f32.xlu1 %v579_v57  ;;  %577 = vadd.xlane.f32.xlu0 %v576_v13  ;;  %s1090_s0 = spop %1089  ;;  %v487_v57 = vld [vmem:[#allocation4 + $0x8] sm:$0xff] }
  0x6a   :  { %v1584_v63 = vstv %s1090_s0 }
  0x6b   :  { %1072 = vmatpush1.bf16.xpose.msra.mxu0 %v1071_v42  ;;  %1088 = vmatpush1.bf16.xpose.msra.mxu1 %v1071_v42 }
  0x72   :  { %245 = vmatmul.mubr.f32.vlgmr.msra.gmra.mrb[0].mxu0 %v1363_v5  ;;  %285 = vmatmul.mubr.f32.vlgmr.msra.gmra.mrb[0].mxu1 %v1441_v53 }
  0x73   :  { %249 = vmatprep.mubr.f32.mxu0 %v1381_v16  ;;  %289 = vmatprep.mubr.f32.mxu1 %v1437_v51  ;;  %v360_v16 = vld [vmem:[#allocation3 + $0x18] sm:$0xff] }
  0x76   :  { %250 = vmatmul.mubr.f32.gmra.mrb[2].mxu0 %v1379_v15  ;;  %290 = vmatmul.mubr.f32.gmra.mrb[2].mxu1 %v1435_v50 }
  0x77   :  { %254 = vmatprep.mubr.f32.mxu0 %v1361_v4  ;;  %294 = vmatprep.mubr.f32.mxu1 %v1463_v7  ;;  %v357_v4 = vld [vmem:[#allocation3] sm:$0xff] }
  0x7a   :  { %255 = vmatmul.mubr.f32.gmra.mrb[4].mxu0 %v1359_v3  ;;  %295 = vmatmul.mubr.f32.gmra.mrb[4].mxu1 %v1461_v6  ;;  %v359_v3 = vld [vmem:[#allocation3 + $0x10] sm:$0xff] }
  0x7b   :  { %259 = vmatprep.mubr.f32.mxu0 %v1373_v11  ;;  %299 = vmatprep.mubr.f32.mxu1 %v1459_v2  ;;  %v363_v2 = vld [vmem:[#allocation3 + $0x30] sm:$0xff] }
  0x7e   :  { %260 = vmatmul.mubr.f32.gmra.mrb[6].mxu0 %v1371_v10  ;;  %300 = vmatmul.mubr.f32.gmra.mrb[6].mxu1 %v1457_v1  ;;  %v364_v1 = vld [vmem:[#allocation3 + $0x38] sm:$0xff] }
  0x7f   :  { %264 = vmatprep.mubr.f32.mxu0 %v1393_v23  ;;  %304 = vmatprep.mubr.f32.mxu1 %v1483_v27  ;;  %v366_v27 = vld [vmem:[#allocation3 + $0x48] sm:$0xff] }
  0x82   :  { %265 = vmatmul.mubr.f32.gmra.mrb[8].mxu0 %v1391_v22  ;;  %305 = vmatmul.mubr.f32.gmra.mrb[8].mxu1 %v1481_v26 }
  0x83   :  { %269 = vmatprep.mubr.f32.mxu0 %v1389_v21  ;;  %309 = vmatprep.mubr.f32.mxu1 %v1479_v25 }
  0x86   :  { %270 = vmatmul.mubr.f32.gmra.mrb[10].mxu0 %v1383_v17  ;;  %310 = vmatmul.mubr.f32.gmra.mrb[10].mxu1 %v1477_v24  ;;  %v358_v17 = vld [vmem:[#allocation3 + $0x8] sm:$0xff] }
  0x87   :  { %274 = vmatprep.mubr.f32.mxu0 %v1415_v38  ;;  %314 = vmatprep.mubr.f32.mxu1 %v1505_v54 }
  0x8a   :  { %275 = vmatmul.mubr.f32.gmra.mrb[12].mxu0 %v1411_v36  ;;  %315 = vmatmul.mubr.f32.gmra.mrb[12].mxu1 %v1503_v52  ;;  %v362_v36 = vld [vmem:[#allocation3 + $0x28] sm:$0xff] }
  0x8b   :  { %279 = vmatprep.mubr.f32.mxu0 %v1409_v35  ;;  %319 = vmatprep.mubr.f32.mxu1 %v1501_v49 }
  0x8e   :  { %280 = vmatmul.mubr.f32.gmra.mrb[14].mxu0 %v1407_v34  ;;  %320 = vmatmul.mubr.f32.gmra.mrb[14].mxu1 %v1499_v48  ;;  %v361_v34 = vld [vmem:[#allocation3 + $0x20] sm:$0xff] }
  0x8f   :  { %v365_v48 = vld [vmem:[#allocation3 + $0x40] sm:$0xff] }
  0xb9   :  { %v413_v5 = vpop.xlane.xlu1 %412 }
  0xba   :  { %v455_v10 = vadd.f32 %v413_v5, %v359_v3  ;;  %v407_v11 = vpop.xlane.xlu0 %406  ;;  %v486_v3 = vld [vmem:[#allocation4] sm:$0xff] }
  0xbb   :  { %v453_v15 = vadd.f32 %v407_v11, %v357_v4 }
  0xbc   :  { %472 = vst.msk [vmem:[#allocation3 + $0x10] sm:$0xff] %vm67_vm0, %v455_v10 }
  0xbd   :  { %470 = vst.msk [vmem:[#allocation3] sm:$0xff] %vm67_vm0, %v453_v15 }
  0xbe   :  { %v416_v21 = vpop.xlane.xlu1 %415  ;;  %v410_v23 = vpop.xlane.xlu0 %409 }
  0xbf   :  { %v456_v22 = vadd.f32 %v416_v21, %v360_v16  ;;  %v454_v35 = vadd.f32 %v410_v23, %v358_v17  ;;  %v489_v17 = vld [vmem:[#allocation4 + $0x18] sm:$0xff]  ;;  %v488_v23 = vld [vmem:[#allocation4 + $0x10] sm:$0xff] }
  0xc1   :  { %473 = vst.msk [vmem:[#allocation3 + $0x18] sm:$0xff] %vm67_vm0, %v456_v22  ;;  %471 = vst.msk [vmem:[#allocation3 + $0x8] sm:$0xff] %vm67_vm0, %v454_v35 }
  0xc2   :  { %v422_v38 = vpop.xlane.xlu1 %421  ;;  %v419_v51 = vpop.xlane.xlu0 %418 }
  0xc3   :  { %v458_v50 = vadd.f32 %v422_v38, %v362_v36  ;;  %v457_v53 = vadd.f32 %v419_v51, %v361_v34  ;;  %v624_v52 = vld [vmem:[#allocation3 + $0x10] sm:$0xff] }
  0xc4   :  { %v622_v6 = vld [vmem:[#allocation3] sm:$0xff] }
  0xc5   :  { %475 = vst.msk [vmem:[#allocation3 + $0x28] sm:$0xff] %vm67_vm0, %v458_v50  ;;  %474 = vst.msk [vmem:[#allocation3 + $0x20] sm:$0xff] %vm67_vm0, %v457_v53  ;;  %1105 = vrsqrt.f32 %v622_v6  ;;  %v491_v6 = vld [vmem:[#allocation4 + $0x28] sm:$0xff] }
  0xc6   :  { %v428_v7 = vpop.xlane.xlu1 %427  ;;  %v425_v25 = vpop.xlane.xlu0 %424 }
  0xc7   :  { %v460_v24 = vadd.f32 %v428_v7, %v364_v1  ;;  %v459_v26 = vadd.f32 %v425_v25, %v363_v2 }
  0xc8   :  { %v623_v49 = vld [vmem:[#allocation3 + $0x8] sm:$0xff]  ;;  %v625_v39 = vld [vmem:[#allocation3 + $0x18] sm:$0xff] }
  0xc9   :  { %477 = vst.msk [vmem:[#allocation3 + $0x38] sm:$0xff] %vm67_vm0, %v460_v24  ;;  %476 = vst.msk [vmem:[#allocation3 + $0x30] sm:$0xff] %vm67_vm0, %v459_v26  ;;  %1107 = vrsqrt.f32 %v623_v49  ;;  %v490_v24 = vld [vmem:[#allocation4 + $0x20] sm:$0xff] }
  0xca   :  { %v434_v54 = vpop.xlane.xlu1 %433  ;;  %v431_v29 = vpop.xlane.xlu0 %430  ;;  %1109 = vrsqrt.f32 %v624_v52 }
  0xcb   :  { %v462_v12 = vadd.f32 %v434_v54, %v366_v27  ;;  %v461_v58 = vadd.f32 %v431_v29, %v365_v48  ;;  %1111 = vrsqrt.f32 %v625_v39  ;;  %v493_v29 = vld [vmem:[#allocation4 + $0x38] sm:$0xff] }
  0xcc   :  { %v626_v20 = vld [vmem:[#allocation3 + $0x20] sm:$0xff]  ;;  %v627_v43 = vld [vmem:[#allocation3 + $0x28] sm:$0xff] }
  0xcd   :  { %479 = vst.msk [vmem:[#allocation3 + $0x48] sm:$0xff] %vm67_vm0, %v462_v12  ;;  %478 = vst.msk [vmem:[#allocation3 + $0x40] sm:$0xff] %vm67_vm0, %v461_v58  ;;  %1113 = vrsqrt.f32 %v626_v20  ;;  %v495_v20 = vld [vmem:[#allocation4 + $0x48] sm:$0xff] }
  0xce   :  { %v440_v56 = vpop.xlane.xlu1 %439  ;;  %v437_v9 = vpop.xlane.xlu0 %436 }
  0xcf   :  { %v464_v46 = vadd.f32 %v440_v56, %v368_v41  ;;  %v1106_v55 = vpop.eup %1105  ;;  %v463_v32 = vadd.f32 %v437_v9, %v367_v59  ;;  %v492_v59 = vld [vmem:[#allocation4 + $0x30] sm:$0xff] }
  0xd0   :  { %v655_v28 = vmul.f32 %v1106_v55, %v1584_v63  ;;  %v628_v4 = vld [vmem:[#allocation3 + $0x30] sm:$0xff]  ;;  %v629_v35 = vld [vmem:[#allocation3 + $0x38] sm:$0xff] }
  0xd1   :  { %481 = vst.msk [vmem:[#allocation3 + $0x58] sm:$0xff] %vm67_vm0, %v464_v46  ;;  %480 = vst.msk [vmem:[#allocation3 + $0x50] sm:$0xff] %vm67_vm0, %v463_v32 }
  0xd2   :  { %v446_v14 = vpop.xlane.xlu1 %445  ;;  %v443_v19 = vpop.xlane.xlu0 %442  ;;  %721 = vperm.xlu0 %1101, %v655_v28  }
  0xd3   :  { %v466_v18 = vadd.f32 %v446_v14, %v370_v62  ;;  %v1108_v33 = vpop.eup %1107  ;;  %v465_v8 = vadd.f32 %v443_v19, %v369_v45  ;;  %v494_v19 = vld [vmem:[#allocation4 + $0x40] sm:$0xff] }
  0xd4   :  { %v631_v61 = vld [vmem:[#allocation3 + $0x48] sm:$0xff]  ;;  %v656_v0 = vmul.f32 %v1108_v33, %v1584_v63  ;;  %v1110_v44 = vpop.eup %1109  ;;  %v630_v25 = vld [vmem:[#allocation3 + $0x40] sm:$0xff] }
  0xd5   :  { %483 = vst.msk [vmem:[#allocation3 + $0x68] sm:$0xff] %vm67_vm0, %v466_v18  ;;  %1115 = vrsqrt.f32 %v631_v61  ;;  %482 = vst.msk [vmem:[#allocation3 + $0x60] sm:$0xff] %vm67_vm0, %v465_v8  ;;  %v657_v42 = vmul.f32 %v1110_v44, %v1584_v63  ;;  %v1112_v5 = vpop.eup %1111 }
  0xd6   :  { %v452_v60 = vpop.xlane.xlu1 %451  ;;  %v449_v47 = vpop.xlane.xlu0 %448  ;;  %726 = vperm.xlu1 %1102, %v656_v0   ;;  %1117 = vrsqrt.f32 %v627_v43  ;;  %v658_v22 = vmul.f32 %v1112_v5, %v1584_v63 }
  0xd7   :  { %v468_v30 = vadd.f32 %v452_v60, %v372_v31  ;;  %v467_v40 = vadd.f32 %v449_v47, %v371_v37  ;;  %v1114_v36 = vpop.eup %1113  ;;  %v497_v60 = vld [vmem:[#allocation4 + $0x58] sm:$0xff] }
  0xd8   :  { %v633_v13 = vld [vmem:[#allocation3 + $0x58] sm:$0xff]  ;;  %v659_v7 = vmul.f32 %v1114_v36, %v1584_v63  ;;  %v632_v39 = vld [vmem:[#allocation3 + $0x50] sm:$0xff] }
  0xd9   :  { %485 = vst.msk [vmem:[#allocation3 + $0x78] sm:$0xff] %vm67_vm0, %v468_v30  ;;  %1119 = vrsqrt.f32 %v633_v13  ;;  %484 = vst.msk [vmem:[#allocation3 + $0x70] sm:$0xff] %vm67_vm0, %v467_v40  ;;  %v496_v40 = vld [vmem:[#allocation4 + $0x50] sm:$0xff] }
  0xda   :  { %v539_v10 = vpop.xlane.xlu1 %538  ;;  %731 = vperm.xlu1 %1102, %v657_v42   ;;  %v536_v11 = vpop.xlane.xlu0 %535  ;;  %1121 = vrsqrt.f32 %v628_v4 }
  0xdb   :  { %v583_v15 = vadd.f32 %v539_v10, %v487_v57  ;;  %v582_v16 = vadd.f32 %v536_v11, %v486_v3  ;;  %v499_v11 = vld [vmem:[#allocation4 + $0x68] sm:$0xff] }
  0xdc   :  { %v635_v21 = vld [vmem:[#allocation3 + $0x68] sm:$0xff]  ;;  %v634_v18 = vld [vmem:[#allocation3 + $0x60] sm:$0xff] }
  0xdd   :  { %599 = vst.msk [vmem:[#allocation4 + $0x8] sm:$0xff] %vm67_vm0, %v583_v15  ;;  %1123 = vrsqrt.f32 %v635_v21  ;;  %598 = vst.msk [vmem:[#allocation4] sm:$0xff] %vm67_vm0, %v582_v16  ;;  %v498_v16 = vld [vmem:[#allocation4 + $0x60] sm:$0xff] }
  0xde   :  { %v545_v34 = vpop.xlane.xlu1 %544  ;;  %736 = vperm.xlu1 %1102, %v658_v22   ;;  %v542_v50 = vpop.xlane.xlu0 %541  ;;  %1125 = vrsqrt.f32 %v629_v35 }
  0xdf   :  { %v1116_v38 = vpop.eup %1115  ;;  %v585_v51 = vadd.f32 %v545_v34, %v489_v17  ;;  %v584_v1 = vadd.f32 %v542_v50, %v488_v23 }
  0xe0   :  { %v664_v53 = vmul.f32 %v1116_v38, %v1584_v63  ;;  %v637_v2 = vld [vmem:[#allocation3 + $0x78] sm:$0xff]  ;;  %v1118_v26 = vpop.eup %1117  ;;  %v636_v47 = vld [vmem:[#allocation3 + $0x70] sm:$0xff] }
  0xe1   :  { %601 = vst.msk [vmem:[#allocation4 + $0x18] sm:$0xff] %vm67_vm0, %v585_v51  ;;  %1127 = vrsqrt.f32 %v637_v2  ;;  %600 = vst.msk [vmem:[#allocation4 + $0x10] sm:$0xff] %vm67_vm0, %v584_v1  ;;  %v660_v58 = vmul.f32 %v1118_v26, %v1584_v63  ;;  %v501_v38 = vld [vmem:[#allocation4 + $0x78] sm:$0xff]  ;;  %v500_v51 = vld [vmem:[#allocation4 + $0x70] sm:$0xff] }
  0xe2   :  { %766 = vperm.xlu0 %1101, %v664_v53   ;;  %v551_v27 = vpop.xlane.xlu1 %550  ;;  %741 = vperm.xlu1 %1102, %v659_v7   ;;  %v548_v49 = vpop.xlane.xlu0 %547  ;;  %1129 = vrsqrt.f32 %v630_v25 }
  0xe3   :  { %v1120_v48 = vpop.eup %1119  ;;  %v587_v52 = vadd.f32 %v551_v27, %v491_v6  ;;  %v586_v12 = vadd.f32 %v548_v49, %v490_v24 }
  0xe4   :  { %v666_v54 = vmul.f32 %v1120_v48, %v1584_v63  ;;  %v671_v41 = vld [vmem:[#allocation4] sm:$0xff]  ;;  %v1122_v56 = vpop.eup %1121  ;;  %v672_v46 = vld [vmem:[#allocation4 + $0x8] sm:$0xff] }
  0xe5   :  { %603 = vst.msk [vmem:[#allocation4 + $0x28] sm:$0xff] %vm67_vm0, %v587_v52  ;;  %602 = vst.msk [vmem:[#allocation4 + $0x20] sm:$0xff] %vm67_vm0, %v586_v12  ;;  %1131 = vrsqrt.f32 %v671_v41  ;;  %v661_v14 = vmul.f32 %v1122_v56, %v1584_v63 }
  0xe6   :  { %776 = vperm.xlu0 %1101, %v666_v54   ;;  %v557_v9 = vpop.xlane.xlu1 %556  ;;  %746 = vperm.xlu1 %1102, %v660_v58   ;;  %v554_v32 = vpop.xlane.xlu0 %553  ;;  %1133 = vrsqrt.f32 %v632_v39 }
  0xe7   :  { %v1124_v55 = vpop.eup %1123  ;;  %v589_v62 = vadd.f32 %v557_v9, %v493_v29  ;;  %v588_v28 = vadd.f32 %v554_v32, %v492_v59  ;;  %1135 = vrsqrt.f32 %v672_v46 }
  0xe8   :  { %v668_v45 = vmul.f32 %v1124_v55, %v1584_v63  ;;  %v1126_v33 = vpop.eup %1125  ;;  %v673_v8 = vld [vmem:[#allocation4 + $0x10] sm:$0xff]  ;;  %1137 = vrsqrt.f32 %v634_v18  ;;  %v674_v13 = vld [vmem:[#allocation4 + $0x18] sm:$0xff] }
  0xe9   :  { %605 = vst.msk [vmem:[#allocation4 + $0x38] sm:$0xff] %vm67_vm0, %v589_v62  ;;  %604 = vst.msk [vmem:[#allocation4 + $0x30] sm:$0xff] %vm67_vm0, %v588_v28  ;;  %v662_v30 = vmul.f32 %v1126_v33, %v1584_v63  ;;  %1139 = vrsqrt.f32 %v673_v8 }
  0xea   :  { %786 = vperm.xlu0 %1101, %v668_v45   ;;  %v563_v31 = vpop.xlane.xlu1 %562  ;;  %751 = vperm.xlu1 %1102, %v661_v14   ;;  %v560_v37 = vpop.xlane.xlu0 %559  ;;  %1141 = vrsqrt.f32 %v636_v47 }
  0xeb   :  { %v1128_v61 = vpop.eup %1127  ;;  %v591_v0 = vadd.f32 %v563_v31, %v495_v20  ;;  %v590_v44 = vadd.f32 %v560_v37, %v494_v19  ;;  %1143 = vrsqrt.f32 %v674_v13 }
  0xec   :  { %v670_v43 = vmul.f32 %v1128_v61, %v1584_v63  ;;  %v1130_v57 = vpop.eup %1129  ;;  %v675_v21 = vld [vmem:[#allocation4 + $0x20] sm:$0xff]  ;;  %v676_v1 = vld [vmem:[#allocation4 + $0x28] sm:$0xff] }
  0xed   :  { %607 = vst.msk [vmem:[#allocation4 + $0x48] sm:$0xff] %vm67_vm0, %v591_v0  ;;  %606 = vst.msk [vmem:[#allocation4 + $0x40] sm:$0xff] %vm67_vm0, %v590_v44  ;;  %v663_v15 = vmul.f32 %v1130_v57, %v1584_v63  ;;  %1145 = vrsqrt.f32 %v675_v21 }
  0xee   :  { %796 = vperm.xlu0 %1101, %v670_v43   ;;  %v569_v42 = vpop.xlane.xlu1 %568  ;;  %756 = vperm.xlu1 %1102, %v662_v30   ;;  %v566_v3 = vpop.xlane.xlu0 %565  ;;  %1147 = vrsqrt.f32 %v676_v1 }
  0xef   :  { %v593_v4 = vadd.f32 %v569_v42, %v497_v60  ;;  %v1132_v5 = vpop.eup %1131  ;;  %v592_v10 = vadd.f32 %v566_v3, %v496_v40 }
  0xf0   :  { %v1134_v17 = vpop.eup %1133  ;;  %v677_v48 = vld [vmem:[#allocation4 + $0x30] sm:$0xff]  ;;  %v678_v54 = vld [vmem:[#allocation4 + $0x38] sm:$0xff] }
  0xf1   :  { %609 = vst.msk [vmem:[#allocation4 + $0x58] sm:$0xff] %vm67_vm0, %v593_v4  ;;  %608 = vst.msk [vmem:[#allocation4 + $0x50] sm:$0xff] %vm67_vm0, %v592_v10  ;;  %v1136_v23 = vpop.eup %1135  ;;  %v665_v50 = vmul.f32 %v1134_v17, %v1584_v63  ;;  %1149 = vrsqrt.f32 %v677_v48 }
  0xf2   :  { %849 = vperm.xlu0 %1101, %v1132_v5   ;;  %v575_v22 = vpop.xlane.xlu1 %574  ;;  %761 = vperm.xlu1 %1102, %v663_v15   ;;  %v572_v35 = vpop.xlane.xlu0 %571  ;;  %1151 = vrsqrt.f32 %v678_v54 }
  0xf3   :  { %v595_v36 = vadd.f32 %v575_v22, %v499_v11  ;;  %v594_v34 = vadd.f32 %v572_v35, %v498_v16  ;;  %v1138_v53 = vpop.eup %1137 }
  0xf4   :  { %v1140_v6 = vpop.eup %1139  ;;  %v667_v26 = vmul.f32 %v1138_v53, %v1584_v63  ;;  %v679_v29 = vld [vmem:[#allocation4 + $0x40] sm:$0xff]  ;;  %v680_v41 = vld [vmem:[#allocation4 + $0x48] sm:$0xff] }
  0xf5   :  { %611 = vst.msk [vmem:[#allocation4 + $0x68] sm:$0xff] %vm67_vm0, %v595_v36  ;;  %610 = vst.msk [vmem:[#allocation4 + $0x60] sm:$0xff] %vm67_vm0, %v594_v34  ;;  %v1142_v27 = vpop.eup %1141  ;;  %1153 = vrsqrt.f32 %v679_v29 }
  0xf6   :  { %854 = vperm.xlu0 %1101, %v1136_v23   ;;  %v581_v2 = vpop.xlane.xlu1 %580  ;;  %771 = vperm.xlu1 %1102, %v665_v50   ;;  %v578_v7 = vpop.xlane.xlu0 %577  ;;  %v669_v52 = vmul.f32 %v1142_v27, %v1584_v63  ;;  %1155 = vrsqrt.f32 %v680_v41 }
  0xf7   :  { %v597_v24 = vadd.f32 %v581_v2, %v501_v38  ;;  %v596_v25 = vadd.f32 %v578_v7, %v500_v51  ;;  %v1144_v49 = vpop.eup %1143 }
  0xf8   :  { %v1146_v12 = vpop.eup %1145  ;;  %v681_v39 = vld [vmem:[#allocation4 + $0x50] sm:$0xff]  ;;  %v682_v63 = vld [vmem:[#allocation4 + $0x58] sm:$0xff] }
  0xf9   :  { %613 = vst.msk [vmem:[#allocation4 + $0x78] sm:$0xff] %vm67_vm0, %v597_v24  ;;  %612 = vst.msk [vmem:[#allocation4 + $0x70] sm:$0xff] %vm67_vm0, %v596_v25  ;;  %v1148_v58 = vpop.eup %1147  ;;  %1157 = vrsqrt.f32 %v681_v39 }
  0xfa   :  { %859 = vperm.xlu0 %1101, %v1140_v6   ;;  %781 = vperm.xlu1 %1102, %v667_v26   ;;  %1159 = vrsqrt.f32 %v682_v63 }
  0xfb   :  { %v1150_v59 = vpop.eup %1149 }
  0xfc   :  { %v1152_v56 = vpop.eup %1151  ;;  %v683_v9 = vld [vmem:[#allocation4 + $0x60] sm:$0xff]  ;;  %v684_v32 = vld [vmem:[#allocation4 + $0x68] sm:$0xff] }
  0xfd   :  { %1161 = vrsqrt.f32 %v683_v9 }
  0xfe   :  { %864 = vperm.xlu0 %1101, %v1144_v49   ;;  %791 = vperm.xlu1 %1102, %v669_v52   ;;  %1163 = vrsqrt.f32 %v684_v32 }
  0xff   :  { %v1154_v46 = vpop.eup %1153 }
 0x100   :  { %v1156_v55 = vpop.eup %1155  ;;  %v685_v45 = vld [vmem:[#allocation4 + $0x70] sm:$0xff]  ;;  %v686_v20 = vld [vmem:[#allocation4 + $0x78] sm:$0xff] }
 0x101   :  { %1165 = vrsqrt.f32 %v685_v45 }
 0x102   :  { %869 = vperm.xlu0 %1101, %v1146_v12   ;;  %1167 = vrsqrt.f32 %v686_v20 }
 0x103   :  { %v1158_v62 = vpop.eup %1157 }
 0x104   :  { %v1160_v28 = vpop.eup %1159 }
 0x106   :  { %874 = vperm.xlu0 %1101, %v1148_v58  }
 0x107   :  { %v1162_v14 = vpop.eup %1161 }
 0x108   :  { %v1164_v18 = vpop.eup %1163 }
 0x10a   :  { %879 = vperm.xlu0 %1101, %v1150_v59  }
 0x10b   :  { %v1166_v19 = vpop.eup %1165 }
 0x10c   :  { %v1168_v33 = vpop.eup %1167 }
 0x10e   :  { %884 = vperm.xlu0 %1101, %v1152_v56  }
 0x112   :  { %889 = vperm.xlu0 %1101, %v1154_v46  }
 0x116   :  { %894 = vperm.xlu0 %1101, %v1156_v55  }
 0x11a   :  { %899 = vperm.xlu0 %1101, %v1158_v62  }
 0x11e   :  { %904 = vperm.xlu0 %1101, %v1160_v28  }
 0x122   :  { %909 = vperm.xlu0 %1101, %v1162_v14  }
 0x126   :  { %914 = vperm.xlu0 %1101, %v1164_v18  }
 0x12a   :  { %919 = vperm.xlu0 %1101, %v1166_v19  }
 0x12e   :  { %924 = vperm.xlu0 %1101, %v1168_v33  }
 0x145   :  { %v246_v8 = vpop.f32.mrb[0].mxu0  ;;  %v286_v31 = vpop.f32.mrb[0].mxu1 }
 0x146   :  { %v248_v61 = vpop.f32.mrb[1].mxu0  ;;  %v288_v37 = vpop.f32.mrb[1].mxu1 }
 0x149   :  { %v251_v0 = vpop.f32.mrb[2].mxu0  ;;  %v291_v43 = vpop.f32.mrb[2].mxu1 }
 0x14a   :  { %v253_v44 = vpop.f32.mrb[3].mxu0  ;;  %v293_v60 = vpop.f32.mrb[3].mxu1 }
 0x14d   :  { %v256_v30 = vpop.f32.mrb[4].mxu0  ;;  %v296_v47 = vpop.f32.mrb[4].mxu1 }
 0x14e   :  { %v258_v40 = vpop.f32.mrb[5].mxu0  ;;  %v298_v57 = vpop.f32.mrb[5].mxu1 }
 0x151   :  { %v261_v13 = vpop.f32.mrb[6].mxu0  ;;  %v301_v42 = vpop.f32.mrb[6].mxu1 }
 0x152   :  { %v722_v3 = vpop.permute.xlu0 %721  ;;  %v263_v4 = vpop.f32.mrb[7].mxu0 }
 0x153   :  { %v799_v5 = vmul.f32 %v722_v3, %v246_v8  ;;  %v303_v10 = vpop.f32.mrb[7].mxu1 }
 0x155   :  { %815 = vxpose.xlu1.b32.start [1/16] %v799_v5, 128  ;;  %v266_v11 = vpop.f32.mrb[8].mxu0  ;;  %v306_v15 = vpop.f32.mrb[8].mxu1 }
 0x156   :  { %v727_v16 = vpop.permute.xlu1 %726  ;;  %v268_v17 = vpop.f32.mrb[9].mxu0 }
 0x157   :  { %v800_v21 = vmul.f32 %v727_v16, %v251_v0  ;;  %v308_v22 = vpop.f32.mrb[9].mxu1 }
 0x159   :  { %816 = vxpose.xlu1.b32.cont [2/16] %v800_v21, 128  ;;  %v271_v23 = vpop.f32.mrb[10].mxu0  ;;  %v311_v35 = vpop.f32.mrb[10].mxu1 }
 0x15a   :  { %v732_v36 = vpop.permute.xlu1 %731  ;;  %v273_v34 = vpop.f32.mrb[11].mxu0 }
 0x15b   :  { %v801_v38 = vmul.f32 %v732_v36, %v256_v30  ;;  %v313_v50 = vpop.f32.mrb[11].mxu1 }
 0x15d   :  { %817 = vxpose.xlu1.b32.cont [3/16] %v801_v38, 128  ;;  %v276_v51 = vpop.f32.mrb[12].mxu0  ;;  %v316_v53 = vpop.f32.mrb[12].mxu1 }
 0x15e   :  { %v737_v1 = vpop.permute.xlu1 %736  ;;  %v278_v2 = vpop.f32.mrb[13].mxu0 }
 0x15f   :  { %v802_v6 = vmul.f32 %v737_v1, %v261_v13  ;;  %v318_v7 = vpop.f32.mrb[13].mxu1 }
 0x161   :  { %818 = vxpose.xlu1.b32.cont [4/16] %v802_v6, 128  ;;  %v281_v24 = vpop.f32.mrb[14].mxu0  ;;  %v321_v48 = vpop.f32.mrb[14].mxu1 }
 0x162   :  { %v742_v25 = vpop.permute.xlu1 %741  ;;  %v283_v26 = vpop.f32.mrb[15].mxu0 }
 0x163   :  { %v803_v27 = vmul.f32 %v742_v25, %v266_v11  ;;  %v323_v49 = vpop.f32.mrb[15].mxu1  ;;  %v767_v56 = vpop.permute.xlu0 %766 }
 0x164   :  { %v808_v63 = vmul.f32 %v767_v56, %v291_v43 }
 0x165   :  { %819 = vxpose.xlu1.b32.cont [5/16] %v803_v27, 128 }
 0x166   :  { %v747_v52 = vpop.permute.xlu1 %746 }
 0x167   :  { %v804_v54 = vmul.f32 %v747_v52, %v271_v23  ;;  %v777_v55 = vpop.permute.xlu0 %776 }
 0x168   :  { %v810_v32 = vmul.f32 %v777_v55, %v301_v42 }
 0x169   :  { %820 = vxpose.xlu1.b32.cont [6/16] %v804_v54, 128 }
 0x16a   :  { %v752_v12 = vpop.permute.xlu1 %751 }
 0x16b   :  { %v805_v29 = vmul.f32 %v752_v12, %v276_v51  ;;  %v787_v28 = vpop.permute.xlu0 %786 }
 0x16c   :  { %v812_v20 = vmul.f32 %v787_v28, %v311_v35 }
 0x16d   :  { %821 = vxpose.xlu1.b32.cont [7/16] %v805_v29, 128 }
 0x16e   :  { %v757_v58 = vpop.permute.xlu1 %756 }
 0x16f   :  { %v806_v41 = vmul.f32 %v757_v58, %v281_v24  ;;  %v797_v19 = vpop.permute.xlu0 %796 }
 0x170   :  { %v814_v33 = vmul.f32 %v797_v19, %v321_v48 }
 0x171   :  { %822 = vxpose.xlu1.b32.cont [8/16] %v806_v41, 128 }
 0x172   :  { %v762_v59 = vpop.permute.xlu1 %761 }
 0x173   :  { %v807_v39 = vmul.f32 %v762_v59, %v286_v31  ;;  %v850_v8 = vpop.permute.xlu0 %849 }
 0x175   :  { %823 = vxpose.xlu1.b32.cont [9/16] %v807_v39, 128 }
 0x176   :  { %v772_v46 = vpop.permute.xlu1 %771 }
 0x177   :  { %v809_v9 = vmul.f32 %v772_v46, %v296_v47  ;;  %v855_v31 = vpop.permute.xlu0 %854 }
 0x179   :  { %824 = vxpose.xlu1.b32.cont [10/16] %v808_v63, 128 }
 0x17a   :  { %v782_v62 = vpop.permute.xlu1 %781 }
 0x17b   :  { %v811_v45 = vmul.f32 %v782_v62, %v306_v15  ;;  %v860_v61 = vpop.permute.xlu0 %859 }
 0x17d   :  { %825 = vxpose.xlu1.b32.cont [11/16] %v809_v9, 128 }
 0x17e   :  { %v792_v14 = vpop.permute.xlu1 %791 }
 0x17f   :  { %v813_v18 = vmul.f32 %v792_v14, %v316_v53  ;;  %v865_v37 = vpop.permute.xlu0 %864 }
 0x181   :  { %826 = vxpose.xlu1.b32.cont [12/16] %v810_v32, 128 }
 0x183   :  { %v870_v0 = vpop.permute.xlu0 %869 }
 0x185   :  { %827 = vxpose.xlu1.b32.cont [13/16] %v811_v45, 128 }
 0x187   :  { %v875_v43 = vpop.permute.xlu0 %874 }
 0x189   :  { %828 = vxpose.xlu1.b32.cont [14/16] %v812_v20, 128 }
 0x18b   :  { %v880_v40 = vpop.permute.xlu0 %879 }
 0x18d   :  { %829 = vxpose.xlu1.b32.cont [15/16] %v813_v18, 128 }
 0x18f   :  { %v885_v42 = vpop.permute.xlu0 %884 }
 0x191   :  { %830 = vxpose.xlu1.b32.end [16/16] %v814_v33, 128 }
 0x193   :  { %v890_v11 = vpop.permute.xlu0 %889 }
 0x197   :  { %v895_v17 = vpop.permute.xlu0 %894 }
 0x19b   :  { %v900_v36 = vpop.permute.xlu0 %899 }
 0x19f   :  { %v905_v50 = vpop.permute.xlu0 %904 }
 0x1a3   :  { %v910_v6 = vpop.permute.xlu0 %909 }
 0x1a7   :  { %v915_v25 = vpop.permute.xlu0 %914 }
 0x1ab   :  { %v920_v52 = vpop.permute.xlu0 %919 }
 0x1af   :  { %v925_v29 = vpop.permute.xlu0 %924 }
 0x1d5   :  { %v831_v44 = vpop.trf.xlu1 }
 0x1d6   :  { %v927_v60 = vmul.f32 %v850_v8, %v831_v44 }
 0x1d8   :  { %943 = vst [vmem:[#allocation12] sm:$0xff] %v927_v60  ;;  %959 = vxpose.xlu0.b32.start [1/16] %v927_v60, 128 }
 0x1d9   :  { %v832_v30 = vpop.trf.xlu1 }
 0x1da   :  { %v928_v47 = vmul.f32 %v855_v31, %v832_v30 }
 0x1dc   :  { %944 = vst [vmem:[#allocation12 + $0x8] sm:$0xff] %v928_v47  ;;  %960 = vxpose.xlu0.b32.cont [2/16] %v928_v47, 128 }
 0x1dd   :  { %v833_v57 = vpop.trf.xlu1 }
 0x1de   :  { %v929_v13 = vmul.f32 %v860_v61, %v833_v57 }
 0x1e0   :  { %945 = vst [vmem:[#allocation12 + $0x10] sm:$0xff] %v929_v13  ;;  %961 = vxpose.xlu0.b32.cont [3/16] %v929_v13, 128 }
 0x1e1   :  { %v834_v3 = vpop.trf.xlu1 }
 0x1e2   :  { %v930_v4 = vmul.f32 %v865_v37, %v834_v3 }
 0x1e4   :  { %946 = vst [vmem:[#allocation12 + $0x18] sm:$0xff] %v930_v4  ;;  %962 = vxpose.xlu0.b32.cont [4/16] %v930_v4, 128 }
 0x1e5   :  { %v835_v5 = vpop.trf.xlu1 }
 0x1e6   :  { %v931_v10 = vmul.f32 %v870_v0, %v835_v5 }
 0x1e8   :  { %947 = vst [vmem:[#allocation12 + $0x20] sm:$0xff] %v931_v10  ;;  %963 = vxpose.xlu0.b32.cont [5/16] %v931_v10, 128 }
 0x1e9   :  { %v836_v15 = vpop.trf.xlu1 }
 0x1ea   :  { %v932_v16 = vmul.f32 %v875_v43, %v836_v15 }
 0x1ec   :  { %948 = vst [vmem:[#allocation12 + $0x28] sm:$0xff] %v932_v16  ;;  %964 = vxpose.xlu0.b32.cont [6/16] %v932_v16, 128 }
 0x1ed   :  { %v837_v21 = vpop.trf.xlu1 }
 0x1ee   :  { %v933_v22 = vmul.f32 %v880_v40, %v837_v21 }
 0x1f0   :  { %949 = vst [vmem:[#allocation12 + $0x30] sm:$0xff] %v933_v22  ;;  %965 = vxpose.xlu0.b32.cont [7/16] %v933_v22, 128 }
 0x1f1   :  { %v838_v23 = vpop.trf.xlu1 }
 0x1f2   :  { %v934_v35 = vmul.f32 %v885_v42, %v838_v23 }
 0x1f4   :  { %950 = vst [vmem:[#allocation12 + $0x38] sm:$0xff] %v934_v35  ;;  %966 = vxpose.xlu0.b32.cont [8/16] %v934_v35, 128 }
 0x1f5   :  { %v839_v34 = vpop.trf.xlu1 }
 0x1f6   :  { %v935_v38 = vmul.f32 %v890_v11, %v839_v34 }
 0x1f8   :  { %951 = vst [vmem:[#allocation12 + $0x40] sm:$0xff] %v935_v38  ;;  %967 = vxpose.xlu0.b32.cont [9/16] %v935_v38, 128 }
 0x1f9   :  { %v840_v51 = vpop.trf.xlu1 }
 0x1fa   :  { %v936_v53 = vmul.f32 %v895_v17, %v840_v51 }
 0x1fc   :  { %952 = vst [vmem:[#allocation12 + $0x48] sm:$0xff] %v936_v53  ;;  %968 = vxpose.xlu0.b32.cont [10/16] %v936_v53, 128 }
 0x1fd   :  { %v841_v1 = vpop.trf.xlu1 }
 0x1fe   :  { %v937_v2 = vmul.f32 %v900_v36, %v841_v1 }
 0x200   :  { %953 = vst [vmem:[#allocation12 + $0x50] sm:$0xff] %v937_v2  ;;  %969 = vxpose.xlu0.b32.cont [11/16] %v937_v2, 128 }
 0x201   :  { %v842_v7 = vpop.trf.xlu1 }
 0x202   :  { %v938_v24 = vmul.f32 %v905_v50, %v842_v7 }
 0x204   :  { %954 = vst [vmem:[#allocation12 + $0x58] sm:$0xff] %v938_v24  ;;  %970 = vxpose.xlu0.b32.cont [12/16] %v938_v24, 128 }
 0x205   :  { %v843_v26 = vpop.trf.xlu1 }
 0x206   :  { %v939_v27 = vmul.f32 %v910_v6, %v843_v26 }
 0x208   :  { %955 = vst [vmem:[#allocation12 + $0x60] sm:$0xff] %v939_v27  ;;  %971 = vxpose.xlu0.b32.cont [13/16] %v939_v27, 128 }
 0x209   :  { %v844_v48 = vpop.trf.xlu1 }
 0x20a   :  { %v940_v49 = vmul.f32 %v915_v25, %v844_v48 }
 0x20c   :  { %956 = vst [vmem:[#allocation12 + $0x68] sm:$0xff] %v940_v49  ;;  %972 = vxpose.xlu0.b32.cont [14/16] %v940_v49, 128 }
 0x20d   :  { %v845_v54 = vpop.trf.xlu1 }
 0x20e   :  { %v941_v12 = vmul.f32 %v920_v52, %v845_v54 }
 0x210   :  { %957 = vst [vmem:[#allocation12 + $0x70] sm:$0xff] %v941_v12  ;;  %973 = vxpose.xlu0.b32.cont [15/16] %v941_v12, 128 }
 0x211   :  { %v846_v58 = vpop.trf.xlu1 }
 0x212   :  { %v942_v41 = vmul.f32 %v925_v29, %v846_v58 }
 0x214   :  { %958 = vst [vmem:[#allocation12 + $0x78] sm:$0xff] %v942_v41  ;;  %974 = vxpose.xlu0.b32.end [16/16] %v942_v41, 128 }
 0x215   :  { %1224 = shalt.err (!%p1221_p6)
}
 0x216   :  { %s1225_s20 = scalar_lea.hbm %s1658_s4, 2048 }
 0x217   :  { %p1226_p7 = scmp.ne.s32.totalorder %s1658_s4, %s1225_s20  ;;  %p1229_p8 = scmp.lt.u32.totalorder %s1225_s20, %s1658_s4 }
 0x219   :  { %p1231_p9 = pnand %p1229_p8, %p1226_p7 }
 0x21b   :  { %1234 = shalt.err (!%p1231_p9)
}
 0x21c   :  { %s1272_s25 = smov 128   ;;  %s1273_s26 = smov 8  }
 0x21d   :  { %1030 = dma.vmem_to_hbm [thread:$0]  %s1025_s16, 2048, %s1658_s4, [#allocation13], %s1272_s25, %s1272_s25, %s1273_s26  }
 0x21e   :  { %s1274_s4 = smov [#allocation11]  }
 0x21f   :  { %s1012_s29 = sshll.u32 %s1274_s4, 4  ;;  %s1013_s29 = int_to_ptr.vmem [resolvable:$true] %s1012_s29 }
 0x220   :  { %s1235_s30 = scalar_lea.vmem %s1013_s29, 2048  ;;  %p1240_p11 = scmp.lt.s32.totalorder %s1013_s29, %s1013_s29 }
 0x221   :  { %p1236_p10 = scmp.ne.s32.totalorder %s1013_s29, %s1235_s30  ;;  %p1241_p12 = scmp.lt.s32.totalorder %s1235_s30, %s1235_s30 }
 0x223   :  { %p1242_p13 = por %p1241_p12, %p1240_p11 }
 0x225   :  { %p1243_p0 = pnand %p1242_p13, %p1236_p10 }
 0x258   :  { %v975_v59 = vpop.trf.xlu0 }
 0x259   :  { %991 = vst [vmem:[#allocation11] sm:$0xff] %v975_v59 }
 0x25c   :  { %v976_v39 = vpop.trf.xlu0 }
 0x25d   :  { %992 = vst [vmem:[#allocation11 + $0x8] sm:$0xff] %v976_v39 }
 0x260   :  { %v977_v56 = vpop.trf.xlu0 }
 0x261   :  { %993 = vst [vmem:[#allocation11 + $0x10] sm:$0xff] %v977_v56 }
 0x264   :  { %v978_v63 = vpop.trf.xlu0 }
 0x265   :  { %994 = vst [vmem:[#allocation11 + $0x18] sm:$0xff] %v978_v63 }
 0x268   :  { %v979_v46 = vpop.trf.xlu0 }
 0x269   :  { %995 = vst [vmem:[#allocation11 + $0x20] sm:$0xff] %v979_v46 }
 0x26c   :  { %v980_v9 = vpop.trf.xlu0 }
 0x26d   :  { %996 = vst [vmem:[#allocation11 + $0x28] sm:$0xff] %v980_v9 }
 0x270   :  { %v981_v55 = vpop.trf.xlu0 }
 0x271   :  { %997 = vst [vmem:[#allocation11 + $0x30] sm:$0xff] %v981_v55 }
 0x274   :  { %v982_v32 = vpop.trf.xlu0 }
 0x275   :  { %998 = vst [vmem:[#allocation11 + $0x38] sm:$0xff] %v982_v32 }
 0x278   :  { %v983_v62 = vpop.trf.xlu0 }
 0x279   :  { %999 = vst [vmem:[#allocation11 + $0x40] sm:$0xff] %v983_v62 }
 0x27c   :  { %v984_v45 = vpop.trf.xlu0 }
 0x27d   :  { %1000 = vst [vmem:[#allocation11 + $0x48] sm:$0xff] %v984_v45 }
 0x280   :  { %v985_v28 = vpop.trf.xlu0 }
 0x281   :  { %1001 = vst [vmem:[#allocation11 + $0x50] sm:$0xff] %v985_v28 }
 0x284   :  { %v986_v20 = vpop.trf.xlu0 }
 0x285   :  { %1002 = vst [vmem:[#allocation11 + $0x58] sm:$0xff] %v986_v20 }
 0x288   :  { %v987_v14 = vpop.trf.xlu0 }
 0x289   :  { %1003 = vst [vmem:[#allocation11 + $0x60] sm:$0xff] %v987_v14 }
 0x28c   :  { %v988_v18 = vpop.trf.xlu0 }
 0x28d   :  { %1004 = vst [vmem:[#allocation11 + $0x68] sm:$0xff] %v988_v18 }
 0x290   :  { %v989_v19 = vpop.trf.xlu0 }
 0x291   :  { %1005 = vst [vmem:[#allocation11 + $0x70] sm:$0xff] %v989_v19 }
 0x294   :  { %v990_v33 = vpop.trf.xlu0 }
 0x295   :  { %1006 = vst [vmem:[#allocation11 + $0x78] sm:$0xff] %v990_v33 }
 0x296   :  { %1246 = shalt.err (!%p1243_p0)
}
 0x297   :  { %s1247_s7 = scalar_lea.hbm %s1657_s3, 2048 }
 0x298   :  { %p1248_p1 = scmp.ne.s32.totalorder %s1657_s3, %s1247_s7  ;;  %p1251_p2 = scmp.lt.u32.totalorder %s1247_s7, %s1657_s3 }
 0x29a   :  { %p1253_p3 = pnand %p1251_p2, %p1248_p1 }
 0x29c   :  { %1256 = shalt.err (!%p1253_p3)
}
 0x29d   :  { %1018 = dma.vmem_to_hbm [thread:$0]  %s1013_s29, 2048, %s1657_s3, [#allocation8], %s1272_s25, %s1272_s25, %s1273_s26  }
 0x29e   :  { %1261 = dma.done.wait [#allocation8], 2048  }
 0x29f   :  { %1262 = vsyncadd [#allocation8], 4294965248 }
 0x2a0   :  { %1263 = dma.done.wait [#allocation13], 2048  }
 0x2a1   :  { %1264 = vsyncadd [#allocation13], 4294965248 }
 0x2a2   :  { %1037 = vsyncpa [#allocation7], 1 }
 0x2a3   :  { %1038 = vsyncpa [#allocation10], 1 }
 0x2a4   :  { %1039 = vsyncpa [#allocation8], 1 }
 0x2a5   :  { %1040 = vsyncpa [#allocation13], 1 }

</bundles_post_ra>
